<compile_context>
chip_gen: v6e
topology: v6e:2x2x1
jax: 0.10.0
libtpu: 0.0.40
codegen_flags: <defaults>
</compile_context>

<pallas_src>
import functools

import numpy as np
import jax
import jax.numpy as jnp
from jax import lax
from jax.experimental import pallas as pl
from jax.experimental.pallas import tpu as pltpu

_LANES = 128


def _round_up(x, m):
    return ((x + m - 1) // m) * m


def _revkl_kernel(consts_ref, means_ref, invc_ref, x_ref, out_ref, *,
                  n_components, dims, tile_rows, n_valid, needs_mask):
    """Per-tile partial sums of  p(x) * (log p(x) - log q(x)).

    consts_ref: (K+1,)          SMEM  log w_k - 0.5*logdet(C_k) - D/2*log(2pi)
                                      (last entry = q's constant, no weight)
    means_ref:  ((K+1)*D,)      SMEM  flattened means
    invc_ref:   ((K+1)*D*D,)    SMEM  flattened inverse covariances
    x_ref:      (D, tile_rows, 128)  VMEM  sample tile, lane/sublane dense
    out_ref:    (1, 8, 128)     VMEM  this tile's partial-sum plane
    """
    X = [x_ref[d] for d in range(dims)]            # D planes of (tile_rows, 128)

    def log_gauss(k):
        # quad = sum_{i,j} A[i,j] * Z_i * Z_j  with A entries as SMEM scalars:
        # pure-VPU quadratic form (exactly equal to sum(Z * (A @ Z)) since the
        # off-diagonal coefficient is A[i,j] + A[j,i]).
        Z = [X[d] - means_ref[k * dims + d] for d in range(dims)]
        base = k * dims * dims
        acc = None
        for i in range(dims):
            t = invc_ref[base + i * dims + i] * (Z[i] * Z[i])
            acc = t if acc is None else acc + t
            for j in range(i + 1, dims):
                a_sym = invc_ref[base + i * dims + j] + invc_ref[base + j * dims + i]
                acc = acc + a_sym * (Z[i] * Z[j])
        return consts_ref[k] - 0.5 * acc           # (tile_rows, 128)

    # log p(x): max-shifted logsumexp over weighted mixture components
    # (consts for k < K already include log w_k).
    ls = [log_gauss(k) for k in range(n_components)]
    m = ls[0]
    for k in range(1, n_components):
        m = jnp.maximum(m, ls[k])
    s = jnp.exp(ls[0] - m)
    for k in range(1, n_components):
        s = s + jnp.exp(ls[k] - m)
    log_p = m + jnp.log(s)
    p = jnp.exp(log_p)

    log_q = log_gauss(n_components)                # q lives in the last slot
    contrib = p * (log_p - log_q)                  # (tile_rows, 128)

    if needs_mask:                                 # zero-out padded samples
        tile_base = pl.program_id(0) * (tile_rows * _LANES)
        row = lax.broadcasted_iota(jnp.int32, (tile_rows, _LANES), 0)
        lane = lax.broadcasted_iota(jnp.int32, (tile_rows, _LANES), 1)
        flat = tile_base + row * _LANES + lane
        contrib = jnp.where(flat < n_valid, contrib, 0.0)

    # Reduce only across row-groups (pure VPU adds across vregs); keep the
    # output lane-dense.  Final tiny reduce happens outside the kernel.
    part = contrib.reshape(tile_rows // 8, 8, _LANES).sum(axis=0)   # (8, 128)
    out_ref[...] = part.reshape(1, 8, _LANES)


def revkl_forward(X, dist_params, q_mean, q_cov, *, max_tile_rows=512):
    """X: (N, D, 1) float32 — same layout as the PyTorch module's forward."""
    N, D, _ = X.shape
    K = len(dist_params)

    # Tiny D x D linear algebra precomputed host-side (numpy, float64).
    log2pi = float(np.log(2.0 * np.pi))
    means, invcs, consts = [], [], []
    for mean, cov, w in dist_params:
        C = np.asarray(cov, np.float64)
        means.append(np.asarray(mean, np.float64).reshape(D))
        invcs.append(np.linalg.inv(C))
        consts.append(np.log(w) - 0.5 * np.log(np.linalg.det(C)) - 0.5 * D * log2pi)
    Cq = np.asarray(q_cov, np.float64)
    means.append(np.asarray(q_mean, np.float64).reshape(D))
    invcs.append(np.linalg.inv(Cq))
    consts.append(-0.5 * np.log(np.linalg.det(Cq)) - 0.5 * D * log2pi)

    consts_a = jnp.asarray(np.asarray(consts, np.float32))                 # (K+1,)
    means_a = jnp.asarray(np.stack(means).reshape(-1).astype(np.float32))  # ((K+1)*D,)
    invcs_a = jnp.asarray(np.stack(invcs).reshape(-1).astype(np.float32))  # ((K+1)*D*D,)

    # Lane/sublane-dense sample layout: (D, rows, 128), samples on the fast axis.
    rows = -(-N // _LANES)
    tile_rows = max(8, min(_round_up(max_tile_rows, 8), _round_up(rows, 8)))
    rows_pad = _round_up(rows, tile_rows)
    n_pad = rows_pad * _LANES
    num_tiles = rows_pad // tile_rows

    x_dn = jnp.transpose(X[:, :, 0], (1, 0)).astype(jnp.float32)           # (D, N)
    x_dn = jnp.pad(x_dn, ((0, 0), (0, n_pad - N)))
    x_tiles = x_dn.reshape(D, rows_pad, _LANES)

    kernel = functools.partial(
        _revkl_kernel, n_components=K, dims=D, tile_rows=tile_rows,
        n_valid=N, needs_mask=(n_pad != N))

    flops_per_gauss = 2 * D * D + 3 * D
    cost = pl.CostEstimate(
        flops=int(n_pad * ((K + 1) * flops_per_gauss + 4 * K + 8)),
        transcendentals=int(n_pad * (K + 2)),
        bytes_accessed=int(x_tiles.size * 4 + num_tiles * 8 * _LANES * 4
                           + (consts_a.size + means_a.size + invcs_a.size) * 4),
    )

    partials = pl.pallas_call(
        kernel,
        out_shape=jax.ShapeDtypeStruct((num_tiles, 8, _LANES), jnp.float32),
        grid=(num_tiles,),
        in_specs=[
            pl.BlockSpec(memory_space=pltpu.MemorySpace.SMEM),   # consts (K+1,)
            pl.BlockSpec(memory_space=pltpu.MemorySpace.SMEM),   # means  ((K+1)*D,)
            pl.BlockSpec(memory_space=pltpu.MemorySpace.SMEM),   # inv covs ((K+1)*D*D,)
            pl.BlockSpec((D, tile_rows, _LANES), lambda i: (0, i, 0)),  # X tile
        ],
        out_specs=pl.BlockSpec((1, 8, _LANES), lambda i: (i, 0, 0)),
        compiler_params=pltpu.CompilerParams(
            dimension_semantics=("parallel",),
            vmem_limit_bytes=32 * 1024 * 1024),
        cost_estimate=cost,
    )(consts_a, means_a, invcs_a, x_tiles)

    # Tiny final reduction over per-tile partial planes (plain XLA).
    return jnp.sum(partials)


def revkl_reference(X, dist_params, q_mean, q_cov):
    """Pure-JAX reference with exactly the PyTorch module's math."""
    def log_normal(X, m, C):
        Z = X - m                                                  # (N, D, 1)
        A = jnp.linalg.inv(C)
        AZ = jnp.einsum('ij,njk->nik', A, Z, precision=jax.lax.Precision.HIGHEST)
        quad = jnp.sum(Z * AZ, axis=1)                             # (N, 1)
        d = m.shape[0]
        return (-quad / 2.0 - jnp.log(jnp.linalg.det(C)) / 2.0
                - d / 2.0 * jnp.log(2.0 * jnp.pi))

    p = jnp.zeros((X.shape[0], 1), jnp.float32)
    for mean, cov, w in dist_params:
        m = jnp.asarray(mean, jnp.float32).reshape(-1, 1)
        C = jnp.asarray(cov, jnp.float32)
        p = p + w * jnp.exp(log_normal(X, m, C))
    log_q = log_normal(X, jnp.asarray(q_mean, jnp.float32),
                       jnp.asarray(q_cov, jnp.float32))
    return jnp.sum(p * (jnp.log(p) - log_q))


if __name__ == "__main__":
    D = 2            # dimensions (BaseDivergence default)
    key = jax.random.PRNGKey(0)

    # fixed mixture p: list of (mean, covariance, weight)
    dist_params = [
        ([-1.0, -1.0], [[1.0, 0.0], [0.0, 1.0]], 0.5),
        ([2.0, 2.0],   [[0.5, 0.1], [0.1, 0.5]], 0.5),
    ]
    # learnable q params, deterministic init as in BaseDivergence.__init__
    q_mean = np.ones((D, 1), np.float32)
    q_cov = np.eye(D, dtype=np.float32)

    # case 1: module default sample_size (exercises padding + masking, 1 tile)
    # case 2: multi-tile grid with per-tile partial sums (no padding)
    for case_i, (N, max_tile_rows) in enumerate([(200, 512), (3072, 8)]):
        X = jax.random.normal(jax.random.fold_in(key, case_i), (N, D, 1),
                              dtype=jnp.float32)
        out = jax.block_until_ready(
            revkl_forward(X, dist_params, q_mean, q_cov,
                          max_tile_rows=max_tile_rows))
        ref = revkl_reference(X, dist_params, q_mean, q_cov)
        assert np.allclose(np.asarray(out), np.asarray(ref),
                           rtol=2e-4, atol=1e-3), (N, float(out), float(ref))
    print("KERNEL_OK")
</pallas_src>

<mosaic_0001>
module attributes {stable_mosaic.version = 11 : i64} {
  func.func @_revkl_kernel(%arg0: i32, %arg1: memref<3xf32, #tpu.memory_space<smem>>, %arg2: memref<6xf32, #tpu.memory_space<smem>>, %arg3: memref<12xf32, #tpu.memory_space<smem>>, %arg4: memref<2x8x128xf32, #tpu.memory_space<vmem>>, %arg5: memref<1x8x128xf32, #tpu.memory_space<vmem>>) attributes {dimension_semantics = [#tpu.dimension_semantics<parallel>], iteration_bounds = array<i64: 1>, scalar_prefetch = 0 : i64, scratch_operands = 0 : i64, tpu.core_type = #tpu.core_type<tc>, window_params = [{transform_indices = @transform_0, window_bounds = array<i64: 3>}, {transform_indices = @transform_1, window_bounds = array<i64: 6>}, {transform_indices = @transform_2, window_bounds = array<i64: 12>}, {transform_indices = @transform_3, window_bounds = array<i64: 2, 8, 128>}, {transform_indices = @transform_4, window_bounds = array<i64: 1, 8, 128>}]} {
    %c0 = arith.constant 0 : index
    %c0_0 = arith.constant 0 : index
    %c0_1 = arith.constant 0 : index
    %0 = vector.load %arg4[%c0, %c0_0, %c0_1] : memref<2x8x128xf32, #tpu.memory_space<vmem>>, vector<1x8x128xf32>
    %1 = vector.shape_cast %0 : vector<1x8x128xf32> to vector<8x128xf32>
    %c1 = arith.constant 1 : index
    %c0_2 = arith.constant 0 : index
    %c0_3 = arith.constant 0 : index
    %2 = vector.load %arg4[%c1, %c0_2, %c0_3] : memref<2x8x128xf32, #tpu.memory_space<vmem>>, vector<1x8x128xf32>
    %3 = vector.shape_cast %2 : vector<1x8x128xf32> to vector<8x128xf32>
    %c0_4 = arith.constant 0 : index
    %4 = memref.load %arg2[%c0_4] : memref<6xf32, #tpu.memory_space<smem>>
    %5 = vector.broadcast %4 : f32 to vector<8x128xf32>
    %6 = arith.subf %1, %5 : vector<8x128xf32>
    %c1_5 = arith.constant 1 : index
    %7 = memref.load %arg2[%c1_5] : memref<6xf32, #tpu.memory_space<smem>>
    %8 = vector.broadcast %7 : f32 to vector<8x128xf32>
    %9 = arith.subf %3, %8 : vector<8x128xf32>
    %c0_6 = arith.constant 0 : index
    %10 = memref.load %arg3[%c0_6] : memref<12xf32, #tpu.memory_space<smem>>
    %11 = arith.mulf %6, %6 : vector<8x128xf32>
    %12 = vector.broadcast %10 : f32 to vector<8x128xf32>
    %13 = arith.mulf %12, %11 : vector<8x128xf32>
    %c1_7 = arith.constant 1 : index
    %14 = memref.load %arg3[%c1_7] : memref<12xf32, #tpu.memory_space<smem>>
    %c2 = arith.constant 2 : index
    %15 = memref.load %arg3[%c2] : memref<12xf32, #tpu.memory_space<smem>>
    %16 = arith.addf %14, %15 : f32
    %17 = arith.mulf %6, %9 : vector<8x128xf32>
    %18 = vector.broadcast %16 : f32 to vector<8x128xf32>
    %19 = arith.mulf %18, %17 : vector<8x128xf32>
    %20 = arith.addf %13, %19 : vector<8x128xf32>
    %c3 = arith.constant 3 : index
    %21 = memref.load %arg3[%c3] : memref<12xf32, #tpu.memory_space<smem>>
    %22 = arith.mulf %9, %9 : vector<8x128xf32>
    %23 = vector.broadcast %21 : f32 to vector<8x128xf32>
    %24 = arith.mulf %23, %22 : vector<8x128xf32>
    %25 = arith.addf %20, %24 : vector<8x128xf32>
    %c0_8 = arith.constant 0 : index
    %26 = memref.load %arg1[%c0_8] : memref<3xf32, #tpu.memory_space<smem>>
    %cst = arith.constant 5.000000e-01 : f32
    %27 = vector.broadcast %cst : f32 to vector<8x128xf32>
    %28 = arith.mulf %27, %25 : vector<8x128xf32>
    %29 = vector.broadcast %26 : f32 to vector<8x128xf32>
    %30 = arith.subf %29, %28 : vector<8x128xf32>
    %c2_9 = arith.constant 2 : index
    %31 = memref.load %arg2[%c2_9] : memref<6xf32, #tpu.memory_space<smem>>
    %32 = vector.broadcast %31 : f32 to vector<8x128xf32>
    %33 = arith.subf %1, %32 : vector<8x128xf32>
    %c3_10 = arith.constant 3 : index
    %34 = memref.load %arg2[%c3_10] : memref<6xf32, #tpu.memory_space<smem>>
    %35 = vector.broadcast %34 : f32 to vector<8x128xf32>
    %36 = arith.subf %3, %35 : vector<8x128xf32>
    %c4 = arith.constant 4 : index
    %37 = memref.load %arg3[%c4] : memref<12xf32, #tpu.memory_space<smem>>
    %38 = arith.mulf %33, %33 : vector<8x128xf32>
    %39 = vector.broadcast %37 : f32 to vector<8x128xf32>
    %40 = arith.mulf %39, %38 : vector<8x128xf32>
    %c5 = arith.constant 5 : index
    %41 = memref.load %arg3[%c5] : memref<12xf32, #tpu.memory_space<smem>>
    %c6 = arith.constant 6 : index
    %42 = memref.load %arg3[%c6] : memref<12xf32, #tpu.memory_space<smem>>
    %43 = arith.addf %41, %42 : f32
    %44 = arith.mulf %33, %36 : vector<8x128xf32>
    %45 = vector.broadcast %43 : f32 to vector<8x128xf32>
    %46 = arith.mulf %45, %44 : vector<8x128xf32>
    %47 = arith.addf %40, %46 : vector<8x128xf32>
    %c7 = arith.constant 7 : index
    %48 = memref.load %arg3[%c7] : memref<12xf32, #tpu.memory_space<smem>>
    %49 = arith.mulf %36, %36 : vector<8x128xf32>
    %50 = vector.broadcast %48 : f32 to vector<8x128xf32>
    %51 = arith.mulf %50, %49 : vector<8x128xf32>
    %52 = arith.addf %47, %51 : vector<8x128xf32>
    %c1_11 = arith.constant 1 : index
    %53 = memref.load %arg1[%c1_11] : memref<3xf32, #tpu.memory_space<smem>>
    %cst_12 = arith.constant 5.000000e-01 : f32
    %54 = vector.broadcast %cst_12 : f32 to vector<8x128xf32>
    %55 = arith.mulf %54, %52 : vector<8x128xf32>
    %56 = vector.broadcast %53 : f32 to vector<8x128xf32>
    %57 = arith.subf %56, %55 : vector<8x128xf32>
    %58 = arith.maximumf %30, %57 : vector<8x128xf32>
    %59 = arith.subf %30, %58 : vector<8x128xf32>
    %60 = math.exp %59 : vector<8x128xf32>
    %61 = arith.subf %57, %58 : vector<8x128xf32>
    %62 = math.exp %61 : vector<8x128xf32>
    %63 = arith.addf %60, %62 : vector<8x128xf32>
    %64 = math.log %63 : vector<8x128xf32>
    %65 = arith.addf %58, %64 : vector<8x128xf32>
    %66 = math.exp %65 : vector<8x128xf32>
    %c4_13 = arith.constant 4 : index
    %67 = memref.load %arg2[%c4_13] : memref<6xf32, #tpu.memory_space<smem>>
    %68 = vector.broadcast %67 : f32 to vector<8x128xf32>
    %69 = arith.subf %1, %68 : vector<8x128xf32>
    %c5_14 = arith.constant 5 : index
    %70 = memref.load %arg2[%c5_14] : memref<6xf32, #tpu.memory_space<smem>>
    %71 = vector.broadcast %70 : f32 to vector<8x128xf32>
    %72 = arith.subf %3, %71 : vector<8x128xf32>
    %c8 = arith.constant 8 : index
    %73 = memref.load %arg3[%c8] : memref<12xf32, #tpu.memory_space<smem>>
    %74 = arith.mulf %69, %69 : vector<8x128xf32>
    %75 = vector.broadcast %73 : f32 to vector<8x128xf32>
    %76 = arith.mulf %75, %74 : vector<8x128xf32>
    %c9 = arith.constant 9 : index
    %77 = memref.load %arg3[%c9] : memref<12xf32, #tpu.memory_space<smem>>
    %c10 = arith.constant 10 : index
    %78 = memref.load %arg3[%c10] : memref<12xf32, #tpu.memory_space<smem>>
    %79 = arith.addf %77, %78 : f32
    %80 = arith.mulf %69, %72 : vector<8x128xf32>
    %81 = vector.broadcast %79 : f32 to vector<8x128xf32>
    %82 = arith.mulf %81, %80 : vector<8x128xf32>
    %83 = arith.addf %76, %82 : vector<8x128xf32>
    %c11 = arith.constant 11 : index
    %84 = memref.load %arg3[%c11] : memref<12xf32, #tpu.memory_space<smem>>
    %85 = arith.mulf %72, %72 : vector<8x128xf32>
    %86 = vector.broadcast %84 : f32 to vector<8x128xf32>
    %87 = arith.mulf %86, %85 : vector<8x128xf32>
    %88 = arith.addf %83, %87 : vector<8x128xf32>
    %c2_15 = arith.constant 2 : index
    %89 = memref.load %arg1[%c2_15] : memref<3xf32, #tpu.memory_space<smem>>
    %cst_16 = arith.constant 5.000000e-01 : f32
    %90 = vector.broadcast %cst_16 : f32 to vector<8x128xf32>
    %91 = arith.mulf %90, %88 : vector<8x128xf32>
    %92 = vector.broadcast %89 : f32 to vector<8x128xf32>
    %93 = arith.subf %92, %91 : vector<8x128xf32>
    %94 = arith.subf %65, %93 : vector<8x128xf32>
    %95 = arith.mulf %66, %94 : vector<8x128xf32>
    %c1024_i32 = arith.constant 1024 : i32
    %96 = arith.muli %arg0, %c1024_i32 : i32
    %97 = tpu.iota {dimensions = array<i32: 0>} : vector<8x128xi32>
    %98 = tpu.iota {dimensions = array<i32: 1>} : vector<8x128xi32>
    %c128_i32 = arith.constant 128 : i32
    %99 = vector.broadcast %c128_i32 : i32 to vector<8x128xi32>
    %100 = arith.muli %97, %99 : vector<8x128xi32>
    %101 = vector.broadcast %96 : i32 to vector<8x128xi32>
    %102 = arith.addi %101, %100 : vector<8x128xi32>
    %103 = arith.addi %102, %98 : vector<8x128xi32>
    %c200_i32 = arith.constant 200 : i32
    %104 = vector.broadcast %c200_i32 : i32 to vector<8x128xi32>
    %105 = arith.cmpi slt, %103, %104 : vector<8x128xi32>
    %cst_17 = arith.constant 0.000000e+00 : f32
    %106 = vector.broadcast %cst_17 : f32 to vector<8x128xf32>
    %107 = arith.select %105, %95, %106 : vector<8x128xi1>, vector<8x128xf32>
    %108 = vector.shape_cast %107 : vector<8x128xf32> to vector<1x8x128xf32>
    %cst_18 = arith.constant dense<0.000000e+00> : vector<8x128xf32>
    %109 = vector.multi_reduction <add>, %108, %cst_18 [0] : vector<1x8x128xf32> to vector<8x128xf32>
    %110 = vector.shape_cast %109 : vector<8x128xf32> to vector<1x8x128xf32>
    %c0_19 = arith.constant 0 : index
    %c0_20 = arith.constant 0 : index
    %c0_21 = arith.constant 0 : index
    %111 = vector.load %arg5[%c0_19, %c0_20, %c0_21] : memref<1x8x128xf32, #tpu.memory_space<vmem>>, vector<1x8x128xf32>
    tpu.vector_store %arg5[%c0_19, %c0_20, %c0_21], %110 {strides = array<i32>} : memref<1x8x128xf32, #tpu.memory_space<vmem>>, vector<1x8x128xf32>,
    return
  }
  func.func @transform_0(%arg0: i32) -> i32 {
    %c0_i32 = arith.constant 0 : i32
    %c0_i32_0 = arith.constant 0 : i32
    return %c0_i32 : i32
  }
  func.func @transform_1(%arg0: i32) -> i32 {
    %c0_i32 = arith.constant 0 : i32
    %c0_i32_0 = arith.constant 0 : i32
    return %c0_i32 : i32
  }
  func.func @transform_2(%arg0: i32) -> i32 {
    %c0_i32 = arith.constant 0 : i32
    %c0_i32_0 = arith.constant 0 : i32
    return %c0_i32 : i32
  }
  func.func @transform_3(%arg0: i32) -> (i32, i32, i32) {
    %c0_i32 = arith.constant 0 : i32
    %c0_i32_0 = arith.constant 0 : i32
    %c0_i32_1 = arith.constant 0 : i32
    return %c0_i32, %arg0, %c0_i32_0 : i32, i32, i32
  }
  func.func @transform_4(%arg0: i32) -> (i32, i32, i32) {
    %c0_i32 = arith.constant 0 : i32
    %c0_i32_0 = arith.constant 0 : i32
    %c0_i32_1 = arith.constant 0 : i32
    return %arg0, %c0_i32, %c0_i32_0 : i32, i32, i32
  }
}

</mosaic_0001>

<bundles_post_ra>
// kernel: tpu_custom_call.1
= control target key start
LH: loop header
LB: loop body
LE: loop exit
PB: predicated region body
PF: predicated region fallthrough
CT: control target
= control target key end

     0   :  { %9 = vsyncpa [#allocation5], 0  ;;  %s366_s0 = inlined_call_operand.hbm [shape: f32[3], index: 0, kind: input, shape index: {}]   ;;  %s367_s1 = inlined_call_operand.vmem [shape: f32[6], index: 1, kind: input, shape index: {}]   ;;  %s368_s2 = inlined_call_operand.vmem [shape: f32[12], index: 2, kind: input, shape index: {}]   ;;  %s369_s3 = inlined_call_operand.hbm [shape: f32[2,8,128], index: 3, kind: input, shape index: {}]   ;;  %s370_s4 = inlined_call_operand.hbm [shape: f32[1,8,128], index: 4, kind: output, shape index: {}]  }
   0x1   :  { %10 = vsyncpa [#allocation6], 0 }
   0x2   :  { %11 = vsyncpa [#allocation9], 0 }
   0x3   :  { %12 = vsyncpa [#allocation3], 0 }
   0x4   :  { %13 = vsyncpa [#allocation4], 0  ;;  %s28_s17 = sshll.u32 %s367_s1, 4  ;;  %s309_s18 = smov [#allocation2]   ;;  %s29_s17 = int_to_ptr.vmem [resolvable:$true] %s28_s17 }
   0x5   :  { %21 = dma.hbm_to_smem %s366_s0, 16, %s309_s18, [#allocation5]  }
   0x6   :  { %s235_s21 = scalar_lea.vmem %s29_s17, 16  ;;  %p240_p1 = scmp.lt.s32.totalorder %s29_s17, %s29_s17 }
   0x7   :  { %p236_p0 = scmp.ne.s32.totalorder %s29_s17, %s235_s21  ;;  %p241_p2 = scmp.lt.s32.totalorder %s235_s21, %s235_s21 }
   0x9   :  { %p242_p3 = por %p241_p2, %p240_p1 }
   0xb   :  { %p243_p4 = pnand %p242_p3, %p236_p0 }
   0xd   :  { %246 = shalt.err (!%p243_p4)
}
   0xe   :  { %s310_s22 = smov [#allocation7]   ;;  %s38_s25 = sshll.u32 %s368_s2, 4  ;;  %s39_s25 = int_to_ptr.vmem [resolvable:$true] %s38_s25 }
   0xf   :  { %31 = dma.vmem_to_smem %s29_s17, 16, %s310_s22, [#allocation6]  }
  0x10   :  { %s247_s1 = scalar_lea.vmem %s39_s25, 16  ;;  %p252_p6 = scmp.lt.s32.totalorder %s39_s25, %s39_s25 }
  0x11   :  { %p248_p5 = scmp.ne.s32.totalorder %s39_s25, %s247_s1  ;;  %p253_p7 = scmp.lt.s32.totalorder %s247_s1, %s247_s1 }
  0x13   :  { %p254_p8 = por %p253_p7, %p252_p6 }
  0x15   :  { %p255_p9 = pnand %p254_p8, %p248_p5 }
  0x17   :  { %258 = shalt.err (!%p255_p9)
}
  0x18   :  { %s311_s0 = smov [#allocation8]   ;;  %s312_s26 = smov [#allocation10]  }
  0x19   :  { %41 = dma.vmem_to_smem %s39_s25, 16, %s311_s0, [#allocation9]  }
  0x1a   :  { %s47_s27 = sshll.u32 %s312_s26, 4  ;;  %s48_s27 = int_to_ptr.vmem [resolvable:$true] %s47_s27 }
  0x1b   :  { %s267_s28 = scalar_lea.vmem %s48_s27, 256  ;;  %p272_p11 = scmp.lt.s32.totalorder %s48_s27, %s48_s27 }
  0x1c   :  { %p268_p10 = scmp.ne.s32.totalorder %s48_s27, %s267_s28  ;;  %p273_p12 = scmp.lt.s32.totalorder %s267_s28, %s267_s28 }
  0x1e   :  { %p274_p13 = por %p273_p12, %p272_p11 }
  0x20   :  { %p275_p0 = pnand %p274_p13, %p268_p10 }
  0x22   :  { %278 = shalt.err (!%p275_p0)
}
  0x23   :  { %s313_s2 = smov 128   ;;  %s314_s29 = smov 8  }
  0x24   :  { %53 = dma.hbm_to_vmem [thread:$0]  %s369_s3, 256, %s48_s27, [#allocation3], %s313_s2, %s313_s2, %s314_s29  }
  0x25   :  { %299 = dma.done.wait [#allocation5], 16  }
  0x26   :  { %300 = vsyncadd [#allocation5], 4294967280 }
  0x27   :  { %301 = dma.done.wait [#allocation6], 16  }
  0x28   :  { %302 = vsyncadd [#allocation6], 4294967280 }
  0x29   :  { %303 = dma.done.wait [#allocation9], 16  }
  0x2a   :  { %304 = vsyncadd [#allocation9], 4294967280 }
  0x2b   :  { %305 = dma.done.wait [#allocation3], 256  }
  0x2c   :  { %306 = vsyncadd [#allocation3], 4294967040 }
  0x2d   :  { %66 = sfence }
  0x2e   :  { %s70_s6 = sld [smem:[#allocation7]]  ;;  %v353_v0 = vld [vmem:[#allocation10] sm:$0xff]  ;;  %v355_v1 = vld [vmem:[#allocation10 + $0x8] sm:$0xff]  ;;  %v164_v63 = vlaneseq  ;;  %s315_s27 = smov [#allocation11]  }
  0x2f   :  { %s194_s7 = sld [smem:[#allocation7 + $0x1]]  ;;  %s182_s28 = sshll.u32 %s315_s27, 4  ;;  %s183_s28 = int_to_ptr.vmem [resolvable:$true] %s182_s28 }
  0x30   :  { %s76_s8 = sld [smem:[#allocation8]]  ;;  %s279_s2 = scalar_lea.vmem %s183_s28, 128 }
  0x31   :  { %s195_s9 = sld [smem:[#allocation8 + $0x1]]  ;;  %p280_p1 = scmp.ne.s32.totalorder %s183_s28, %s279_s2 }
  0x32   :  { %s196_s10 = sld [smem:[#allocation8 + $0x2]]  ;;  %p284_p2 = scmp.lt.s32.totalorder %s183_s28, %s183_s28 }
  0x33   :  { %s197_s11 = sld [smem:[#allocation8 + $0x3]]  ;;  %p285_p3 = scmp.lt.s32.totalorder %s279_s2, %s279_s2 }
  0x34   :  { %v71_v2 = vstv %s70_s6  ;;  %s198_s3 = sld [smem:[#allocation7 + $0x2]] }
  0x35   :  { %v72_v3 = vsub.f32 %v353_v0, %v71_v2  ;;  %v74_v4 = vstv %s194_s7  ;;  %s199_s12 = sld [smem:[#allocation7 + $0x3]]  ;;  %p286_p4 = por %p285_p3, %p284_p2 }
  0x36   :  { %v75_v5 = vsub.f32 %v355_v1, %v74_v4  ;;  %v78_v6 = vstv %s76_s8  ;;  %s200_s13 = sld [smem:[#allocation8 + $0x4]] }
  0x37   :  { %v77_v7 = vmul.f32 %v72_v3, %v72_v3  ;;  %s201_s15 = sld [smem:[#allocation8 + $0x5]]  ;;  %p287_p5 = pnand %p286_p4, %p280_p1 }
  0x38   :  { %s82_s14 = sadd.f32 %s196_s10, %s195_s9  ;;  %v83_v8 = vmul.f32 %v75_v5, %v72_v3  ;;  %v88_v10 = vmul.f32 %v75_v5, %v75_v5  ;;  %v167_v5 = vand.u32 127, %v164_v63 }
  0x39   :  { %v79_v9 = vmul.f32 %v78_v6, %v77_v7  ;;  %v89_v12 = vstv %s197_s11  ;;  %s202_s16 = sld [smem:[#allocation8 + $0x6]] }
  0x3a   :  { %v84_v11 = vstv %s82_s14  ;;  %v97_v14 = vstv %s198_s3  ;;  %s203_s17 = sld [smem:[#allocation8 + $0x7]]  ;;  %v90_v18 = vmul.f32 %v89_v12, %v88_v10 }
  0x3b   :  { %v85_v13 = vmul.f32 %v84_v11, %v83_v8  ;;  %v98_v15 = vsub.f32 %v353_v0, %v97_v14  ;;  %v100_v16 = vstv %s199_s12  ;;  %s92_s18 = sld [smem:[#allocation2]] }
  0x3c   :  { %v101_v19 = vsub.f32 %v355_v1, %v100_v16  ;;  %v104_v21 = vstv %s200_s13  ;;  %s204_s19 = sld [smem:[#allocation2 + $0x1]] }
  0x3d   :  { %v86_v17 = vadd.f32 %v85_v13, %v79_v9  ;;  %v103_v20 = vmul.f32 %v98_v15, %v98_v15  ;;  %s205_s21 = sld [smem:[#allocation7 + $0x4]] }
  0x3e   :  { %v109_v22 = vmul.f32 %v101_v19, %v98_v15  ;;  %v114_v23 = vmul.f32 %v101_v19, %v101_v19  ;;  %s206_s22 = sld [smem:[#allocation7 + $0x5]] }
  0x3f   :  { %s108_s20 = sadd.f32 %s202_s16, %s201_s15  ;;  %v91_v24 = vadd.f32 %v90_v18, %v86_v17  ;;  %v105_v25 = vmul.f32 %v104_v21, %v103_v20 }
  0x40   :  { %v115_v26 = vstv %s203_s17  ;;  %s208_s23 = sld [smem:[#allocation8 + $0x9]] }
  0x41   :  { %v110_v27 = vstv %s108_s20  ;;  %v116_v29 = vmul.f32 %v115_v26, %v114_v23  ;;  %v93_v30 = vmul.f32 0.5, %v91_v24  ;;  %v94_v32 = vstv %s92_s18  ;;  %s209_s24 = sld [smem:[#allocation8 + $0xa]] }
  0x42   :  { %v111_v28 = vmul.f32 %v110_v27, %v109_v22  ;;  %v120_v34 = vstv %s204_s19  ;;  %s207_s25 = sld [smem:[#allocation8 + $0x8]] }
  0x43   :  { %v95_v35 = vsub.f32 %v94_v32, %v93_v30  ;;  %v136_v46 = vstv %s205_s21  ;;  %s210_s1 = sld [smem:[#allocation8 + $0xb]] }
  0x44   :  { %v112_v31 = vadd.f32 %v111_v28, %v105_v25  ;;  %v139_v47 = vstv %s206_s22  ;;  %v137_v48 = vsub.f32 %v353_v0, %v136_v46  ;;  %s211_s26 = sld [smem:[#allocation2 + $0x2]] }
  0x45   :  { %v140_v49 = vsub.f32 %v355_v1, %v139_v47  ;;  %v165_v1 = vshrl.u32 %v164_v63, 7 }
  0x46   :  { %v117_v33 = vadd.f32 %v116_v29, %v112_v31  ;;  %v142_v50 = vmul.f32 %v137_v48, %v137_v48 }
  0x47   :  { %s147_s0 = sadd.f32 %s209_s24, %s208_s23  ;;  %v148_v51 = vmul.f32 %v140_v49, %v137_v48  ;;  %v153_v56 = vmul.f32 %v140_v49, %v140_v49  ;;  %v168_v6 = vmul.u32 128, %v165_v1 }
  0x48   :  { %v119_v36 = vmul.f32 0.5, %v117_v33  ;;  %v143_v52 = vstv %s207_s25 }
  0x49   :  { %v149_v53 = vstv %s147_s0  ;;  %v144_v54 = vmul.f32 %v143_v52, %v142_v50  ;;  %v154_v57 = vstv %s210_s1  ;;  %v171_v8 = vadd.s32 %v168_v6, %v167_v5 }
  0x4a   :  { %v121_v37 = vsub.f32 %v120_v34, %v119_v36  ;;  %v150_v55 = vmul.f32 %v149_v53, %v148_v51  ;;  %v155_v61 = vmul.f32 %v154_v57, %v153_v56  ;;  %v159_v4 = vstv %s211_s26 }
  0x4b   :  { %vm172_vm0 = vcmp.lt.s32.totalorder %v171_v8, 200 }
  0x4c   :  { %v122_v38 = vmax.f32 %v95_v35, %v121_v37  ;;  %v151_v60 = vadd.f32 %v150_v55, %v144_v54 }
  0x4e   :  { %v123_v39 = vsub.f32 %v95_v35, %v122_v38  ;;  %v126_v40 = vsub.f32 %v121_v37, %v122_v38  ;;  %v156_v2 = vadd.f32 %v155_v61, %v151_v60 }
  0x50   :  { %v124_v41 = vmul.f32 1.442695, %v123_v39  ;;  %v127_v42 = vmul.f32 1.442695, %v126_v40  ;;  %v158_v3 = vmul.f32 0.5, %v156_v2 }
  0x52   :  { %219 = vpow2.f32 %v124_v41  ;;  %v160_v7 = vsub.f32 %v159_v4, %v158_v3 }
  0x53   :  { %221 = vpow2.f32 %v127_v42 }
  0x5f   :  { %v220_v43 = vpop.eup %219 }
  0x60   :  { %v222_v44 = vpop.eup %221 }
  0x61   :  { %v129_v45 = vadd.f32 %v222_v44, %v220_v43 }
  0x63   :  { %223 = vlog2.f32 %v129_v45 }
  0x70   :  { %v224_v58 = vpop.eup %223 }
  0x71   :  { %v131_v59 = vmul.f32 0.6931472, %v224_v58 }
  0x73   :  { %v132_v62 = vadd.f32 %v131_v59, %v122_v38 }
  0x75   :  { %v133_v0 = vmul.f32 1.442695, %v132_v62  ;;  %v161_v9 = vsub.f32 %v132_v62, %v160_v7 }
  0x77   :  { %225 = vpow2.f32 %v133_v0 }
  0x84   :  { %v226_v10 = vpop.eup %225 }
  0x85   :  { %v162_v11 = vmul.f32 %v226_v10, %v161_v9 }
  0x87   :  { %v173_v12 = vsel %vm172_vm0, %v162_v11, 0.0 }
  0x88   :  { %175 = vst [vmem:[#allocation11] sm:$0xff] %v173_v12 }
  0x89   :  { %290 = shalt.err (!%p287_p5)
}
  0x8a   :  { %185 = dma.vmem_to_hbm [thread:$0]  %s183_s28, 128, %s370_s4, [#allocation4]  }
  0x8b   :  { %307 = dma.done.wait [#allocation4], 128  }
  0x8c   :  { %308 = vsyncadd [#allocation4], 4294967168 }
  0x8d   :  { %189 = vsyncpa [#allocation3], 1 }
  0x8e   :  { %190 = vsyncpa [#allocation4], 1 }
  0x8f   :  { %191 = vsyncpa [#allocation5], 1 }
  0x90   :  { %192 = vsyncpa [#allocation6], 1 }
  0x91   :  { %193 = vsyncpa [#allocation9], 1 }

</bundles_post_ra>
